<compile_context>
chip_gen: v6e
topology: v6e:2x2x1
jax: 0.10.0
libtpu: 0.0.40
codegen_flags: <defaults>
</compile_context>

<pallas_src>
import jax
import jax.numpy as jnp
from jax import lax
from jax.experimental import pallas as pl
from jax.experimental.pallas import tpu as pltpu

_LANE = 128
_SUBLANE = 8


def _round_up(x, m):
    return ((x + m - 1) // m) * m


# ---------------------------------------------------------------------------
# Generation-aware VMEM budgeting.
# ---------------------------------------------------------------------------
def _tpu_vmem_capacity_bytes():
    """Physical VMEM per TensorCore; conservative 64 MiB (v7x-class) fallback."""
    try:
        info = pltpu.get_tpu_info()
        cap = int(getattr(info, "vmem_capacity_bytes", 0) or 0)
        if cap > 0:
            return cap
    except Exception:
        pass
    return 64 * 1024 * 1024


def _default_vmem_limit_bytes(capacity):
    # ~96 MiB scoped limit on 128 MiB parts (v5e/v6e), ~48 MiB on 64 MiB (v7x).
    return min((capacity * 3) // 4, 100 * 1024 * 1024)


def _num_planes(x):
    return 1 if x.dtype == jnp.bfloat16 else 3


def _resident_table_bytes(n_nodes, n_rel, n_dim, p_emb, p_rel):
    """VMEM held by the resident bf16 plane tables (constant-index_map inputs are
    still double-buffered by the pipeline, hence the leading 2x).
    TODO(synk): single-buffer the resident tables (pipeline_mode=pl.Buffered(1))
    once universally supported, halving this term (most valuable on v7x)."""
    d = _round_up(max(n_dim, 1), 16)            # bf16 sublane packing
    return 2 * 2 * d * (p_emb * _round_up(n_nodes, _LANE)
                        + p_rel * _round_up(n_rel, _LANE))


def _to_bf16_planes_t(x):
    """(rows, D) table -> (planes, D, rows) bf16 hi/mid/lo split.
    Exact: summing the per-plane gathers in f32 reconstructs the original f32
    values bit-exactly (24-bit mantissa == 3 x 8-bit bf16 planes).  A bf16
    table needs a single plane (one DEFAULT-precision MXU pass per gather)."""
    if x.dtype == jnp.bfloat16:
        return x.T[jnp.newaxis]                                  # (1, D, rows)
    x = x.astype(jnp.float32)
    hi = x.astype(jnp.bfloat16)
    rem = x - hi.astype(jnp.float32)
    mid = rem.astype(jnp.bfloat16)
    lo = (rem - mid.astype(jnp.float32)).astype(jnp.bfloat16)
    return jnp.stack([hi.T, mid.T, lo.T])                        # (3, D, rows)


# ---------------------------------------------------------------------------
# Path A: VMEM-resident tables, one-hot MXU gather.
# ---------------------------------------------------------------------------
def _distmult_onehot_kernel(emb_ref, rel_ref, idx_ref, out_ref):
    """emb_ref: (P, D, n_nodes) bf16 planes (VMEM-resident),
    rel_ref: (P, D, n_rel) bf16 planes, idx_ref: (3, tile) int32,
    out_ref: (1, tile) f32."""
    tile = idx_ref.shape[1]
    n_nodes = emb_ref.shape[2]
    n_rel = rel_ref.shape[2]

    s_idx = idx_ref[0:1, :]                                      # (1, tile)
    r_idx = idx_ref[1:2, :]
    o_idx = idx_ref[2:3, :]

    # One shared iota / one-hot for the lane-concatenated [s | o] indices, so the
    # two node gathers share one batched matmul per plane.  One-hot built
    # directly in bf16 (0/1 exact); out-of-range indices give an all-zero column
    # (score 0) rather than an error.
    so_idx = jnp.concatenate([s_idx, o_idx], axis=1)             # (1, 2*tile)
    node_iota = lax.broadcasted_iota(jnp.int32, (n_nodes, 2 * tile), 0)
    oh_so = (node_iota == so_idx).astype(jnp.bfloat16)           # (n_nodes, 2*tile)
    rel_iota = lax.broadcasted_iota(jnp.int32, (n_rel, tile), 0)
    oh_r = (rel_iota == r_idx).astype(jnp.bfloat16)              # (n_rel, tile)

    def gather(planes_ref, one_hot):
        # Sum of per-plane DEFAULT-precision bf16 MXU dots, accumulated in f32:
        # exact selection + exact f32 reconstruction.
        acc = jnp.dot(planes_ref[0], one_hot, preferred_element_type=jnp.float32)
        for p in range(1, planes_ref.shape[0]):
            acc = acc + jnp.dot(planes_ref[p], one_hot,
                                preferred_element_type=jnp.float32)
        return acc

    so = gather(emb_ref, oh_so)                                  # (D, 2*tile) f32
    r = gather(rel_ref, oh_r)                                    # (D, tile)   f32
    s = so[:, :tile]
    o = so[:, tile:]

    # Elementwise product, cross-sublane reduce -> lane-dense (1, tile) store.
    out_ref[...] = jnp.sum((s * r) * o, axis=0, keepdims=True)


def _pick_tile_onehot(n_triples, n_nodes, n_rel, n_dim, requested,
                      vmem_budget_bytes, split_for_two_cores):
    nn = max(_round_up(n_nodes, _SUBLANE), _SUBLANE)
    nr = max(_round_up(n_rel, _SUBLANE), _SUBLANE)
    # Per-triple-column working set: [s|o] one-hot (bf16) + int32 iota + bool
    # mask, relation one-hot/iota/mask, gathered f32 slabs + elementwise temps,
    # double-buffered idx/score pipeline tiles.  1.5x safety for layout padding.
    per_col = ((2 + 4 + 1) * (2 * nn)
               + (2 + 4 + 1) * nr
               + 4 * 5 * max(n_dim, _SUBLANE)
               + 2 * (3 * 4 + 4))
    per_col = (per_col * 3) // 2
    cap = max(_LANE, (max(vmem_budget_bytes, 0) // per_col) // _LANE * _LANE)
    tile = min(requested, cap, _round_up(max(n_triples, 1), _LANE))
    if split_for_two_cores:
        # Keep >= 2 grid steps so both v7x TensorCores get a share of the work.
        half = _round_up(pl.cdiv(max(n_triples, 1), 2), _LANE)
        tile = min(tile, half)
    return max(_LANE, tile)


def _distmult_onehot(embeddings, R, idx, n_triples, *, tile_m, vmem_limit_bytes,
                     split_for_two_cores, table_bytes):
    n_nodes, n_dim = embeddings.shape
    n_rel = R.shape[0]

    emb_planes = _to_bf16_planes_t(embeddings)                   # (Pe, D, n_nodes)
    rel_planes = _to_bf16_planes_t(R)                            # (Pr, D, n_rel)

    budget = max(vmem_limit_bytes - table_bytes - (2 << 20), 4 << 20)
    tile = _pick_tile_onehot(n_triples, n_nodes, n_rel, n_dim, tile_m, budget,
                             split_for_two_cores)

    # Pad only the cheap int32 indices (padded columns select row 0, sliced off).
    t_padded = pl.cdiv(n_triples, tile) * tile
    idx = jnp.pad(idx, ((0, 0), (0, t_padded - n_triples)))

    scores = pl.pallas_call(
        _distmult_onehot_kernel,
        out_shape=jax.ShapeDtypeStruct((1, t_padded), jnp.float32),
        grid_spec=pltpu.PrefetchScalarGridSpec(
            num_scalar_prefetch=0,
            grid=(t_padded // tile,),
            in_specs=[
                # Constant block index -> bf16 plane tables stay VMEM-resident.
                pl.BlockSpec((emb_planes.shape[0], n_dim, n_nodes),
                             lambda i: (0, 0, 0)),
                pl.BlockSpec((rel_planes.shape[0], n_dim, n_rel),
                             lambda i: (0, 0, 0)),
                pl.BlockSpec((3, tile), lambda i: (0, i)),
            ],
            out_specs=pl.BlockSpec((1, tile), lambda i: (0, i)),
        ),
        compiler_params=pltpu.CompilerParams(
            dimension_semantics=("parallel",),
            vmem_limit_bytes=vmem_limit_bytes,
        ),
    )(emb_planes, rel_planes, idx)
    return scores[0, :n_triples]


# ---------------------------------------------------------------------------
# Path B: scalar-prefetched indices + per-row DMA gather from HBM tables.
# ---------------------------------------------------------------------------
def _distmult_row_gather_kernel(idx_ref, emb_hbm, rel_hbm, out_ref,
                                s_buf, r_buf, o_buf, sem):
    """idx_ref: (3, T_padded) int32 in SMEM, emb_hbm/rel_hbm: HBM tables,
    out_ref: (tile, 1) f32, s/r/o_buf: (tile, D) VMEM scratch, sem: DMA (3,)."""
    tile = s_buf.shape[0]
    base = pl.program_id(0) * tile

    def start_row(j):
        si = idx_ref[0, base + j]
        ri = idx_ref[1, base + j]
        oi = idx_ref[2, base + j]
        pltpu.make_async_copy(emb_hbm.at[pl.ds(si, 1)],
                              s_buf.at[pl.ds(j, 1)], sem.at[0]).start()
        pltpu.make_async_copy(rel_hbm.at[pl.ds(ri, 1)],
                              r_buf.at[pl.ds(j, 1)], sem.at[1]).start()
        pltpu.make_async_copy(emb_hbm.at[pl.ds(oi, 1)],
                              o_buf.at[pl.ds(j, 1)], sem.at[2]).start()

    def wait_row(j):
        # Waits only pace the DMA queue (every copy has the same row size); the
        # buffers are not read until all 3*tile row copies have been waited on.
        pltpu.make_async_copy(emb_hbm.at[pl.ds(0, 1)],
                              s_buf.at[pl.ds(j, 1)], sem.at[0]).wait()
        pltpu.make_async_copy(rel_hbm.at[pl.ds(0, 1)],
                              r_buf.at[pl.ds(j, 1)], sem.at[1]).wait()
        pltpu.make_async_copy(emb_hbm.at[pl.ds(0, 1)],
                              o_buf.at[pl.ds(j, 1)], sem.at[2]).wait()

    lookahead = min(8, tile)        # modest number of in-flight row DMAs
    for j in range(lookahead):      # static prologue
        start_row(j)

    def body(j, carry):
        @pl.when(j + lookahead < tile)
        def _():
            start_row(j + lookahead)
        wait_row(j)
        return carry

    lax.fori_loop(0, tile, body, 0)

    s = s_buf[...].astype(jnp.float32)
    r = r_buf[...].astype(jnp.float32)
    o = o_buf[...].astype(jnp.float32)
    # (tile, 1) store is lane-sparse, but this path is DMA-issue bound anyway.
    out_ref[...] = jnp.sum((s * r) * o, axis=1, keepdims=True)


def _distmult_row_gather(embeddings, R, idx, n_triples, *, tile_m,
                         vmem_limit_bytes):
    n_nodes, n_dim = embeddings.shape
    n_rel = R.shape[0]

    tile = min(_round_up(max(n_triples, 1), _LANE), _round_up(tile_m, _LANE))
    row_bytes = 3 * max(n_dim, _LANE) * embeddings.dtype.itemsize
    cap = max(_LANE, ((vmem_limit_bytes // 2) // row_bytes) // _LANE * _LANE)
    tile = min(tile, cap)

    t_padded = pl.cdiv(n_triples, tile) * tile
    idx = jnp.pad(idx, ((0, 0), (0, t_padded - n_triples)))
    # TODO(synk): chunk the scalar-prefetched index array for very large
    # n_triples (SMEM capacity) and double-buffer whole row *tiles* of DMAs.

    scores = pl.pallas_call(
        _distmult_row_gather_kernel,
        out_shape=jax.ShapeDtypeStruct((t_padded, 1), jnp.float32),
        grid_spec=pltpu.PrefetchScalarGridSpec(
            num_scalar_prefetch=1,
            grid=(t_padded // tile,),
            in_specs=[pl.BlockSpec(memory_space=pl.ANY),    # embeddings in HBM
                      pl.BlockSpec(memory_space=pl.ANY)],   # R in HBM
            out_specs=pl.BlockSpec((tile, 1), lambda i, idx_ref: (i, 0)),
            scratch_shapes=[pltpu.VMEM((tile, n_dim), embeddings.dtype),
                            pltpu.VMEM((tile, n_dim), R.dtype),
                            pltpu.VMEM((tile, n_dim), embeddings.dtype),
                            pltpu.SemaphoreType.DMA((3,))],
        ),
        compiler_params=pltpu.CompilerParams(
            dimension_semantics=("arbitrary",),
            vmem_limit_bytes=vmem_limit_bytes,
        ),
    )(idx, embeddings, R)
    return scores[:n_triples, 0]


# ---------------------------------------------------------------------------
# Public wrapper (matches DistMult.forward semantics).
# ---------------------------------------------------------------------------
def distmult_scores(embeddings, R, triples, *, tile_m=4096, gather_tile_m=512,
                    vmem_limit_bytes=None, gather_ratio=8):
    """embeddings: (n_nodes, n_dim), R: (n_rel, n_dim), triples: (3, n_triples)
    -> (n_triples,) f32 scores = (emb[triples[0]] * R[triples[1]] * emb[triples[2]]).sum(-1)."""
    n_nodes, n_dim = embeddings.shape
    n_rel, n_dim_r = R.shape
    assert n_dim_r == n_dim, "embedding / relation dims must match"
    assert triples.shape[0] == 3
    n_triples = triples.shape[1]
    if n_triples == 0:
        return jnp.zeros((0,), jnp.float32)

    idx = triples.astype(jnp.int32)

    if embeddings.dtype != jnp.bfloat16:
        embeddings = embeddings.astype(jnp.float32)
    if R.dtype != jnp.bfloat16:
        R = R.astype(jnp.float32)

    capacity = _tpu_vmem_capacity_bytes()
    if vmem_limit_bytes is None:
        vmem_limit_bytes = _default_vmem_limit_bytes(capacity)
    # 64-MiB-class parts (v7x, 2 TensorCores): keep >= 2 grid steps.
    split_for_two_cores = capacity < 100 * 1024 * 1024

    table_bytes = _resident_table_bytes(n_nodes, n_rel, n_dim,
                                        _num_planes(embeddings), _num_planes(R))
    # The one-hot MXU gather wastes ~n_nodes/n_dim x FLOPs once n_nodes >> D,
    # and needs the plane tables to fit comfortably under the scoped limit.
    use_onehot = (n_nodes <= gather_ratio * n_dim
                  and table_bytes <= vmem_limit_bytes // 4)

    if use_onehot:
        return _distmult_onehot(embeddings, R, idx, n_triples, tile_m=tile_m,
                                vmem_limit_bytes=vmem_limit_bytes,
                                split_for_two_cores=split_for_two_cores,
                                table_bytes=table_bytes)
    return _distmult_row_gather(embeddings, R, idx, n_triples,
                                tile_m=gather_tile_m,
                                vmem_limit_bytes=vmem_limit_bytes)


if __name__ == "__main__":
    key = jax.random.PRNGKey(0)

    def reference(emb, rel, tr):
        s = emb[tr[0, :], :]
        r = rel[tr[1, :], :]
        o = emb[tr[2, :], :]
        return jnp.sum(s * r * o, axis=-1)

    # (n_nodes, n_rel, n_dim, n_triples):
    #   first two configs -> VMEM-resident one-hot MXU path (even grid / padding),
    #   last config (n_nodes >> n_dim) -> scalar-prefetch DMA row-gather path.
    configs = [(64, 8, 32, 256), (64, 8, 32, 1000), (512, 8, 32, 300)]
    for ci, (n_nodes, n_rel, n_dim, n_triples) in enumerate(configs):
        k_emb, k_rel, k_s, k_r, k_o = jax.random.split(
            jax.random.fold_in(key, ci), 5)
        embeddings = jax.random.uniform(k_emb, (n_nodes, n_dim), dtype=jnp.float32)
        R = jax.random.uniform(k_rel, (n_rel, n_dim), dtype=jnp.float32)
        triples = jnp.stack([
            jax.random.randint(k_s, (n_triples,), 0, n_nodes),
            jax.random.randint(k_r, (n_triples,), 0, n_rel),
            jax.random.randint(k_o, (n_triples,), 0, n_nodes),
        ]).astype(jnp.int32)                                     # (3, n_triples)

        scores = jax.block_until_ready(distmult_scores(embeddings, R, triples))
        expected = reference(embeddings, R, triples)
        assert scores.shape == (n_triples,)
        max_err = float(jnp.max(jnp.abs(scores - expected)))
        assert jnp.allclose(scores, expected, atol=1e-5, rtol=1e-5), (
            f"mismatch for config {ci} {(n_nodes, n_rel, n_dim, n_triples)}: "
            f"max abs err {max_err}")

    print("KERNEL_OK")
</pallas_src>

<mosaic_0001>
module attributes {stable_mosaic.version = 11 : i64} {
  func.func @_distmult_onehot_kernel(%arg0: i32, %arg1: memref<3x32x64xbf16, #tpu.memory_space<vmem>>, %arg2: memref<3x32x8xbf16, #tpu.memory_space<vmem>>, %arg3: memref<3x128xi32, #tpu.memory_space<vmem>>, %arg4: memref<1x128xf32, #tpu.memory_space<vmem>>) attributes {dimension_semantics = [#tpu.dimension_semantics<parallel>], iteration_bounds = array<i64: 2>, scalar_prefetch = 0 : i64, scratch_operands = 0 : i64, tpu.core_type = #tpu.core_type<tc>, window_params = [{pipeline_mode = #tpu.pipeline_mode<synchronous>, transform_indices = @transform_0, window_bounds = array<i64: 3, 32, 64>}, {pipeline_mode = #tpu.pipeline_mode<synchronous>, transform_indices = @transform_1, window_bounds = array<i64: 3, 32, 8>}, {transform_indices = @transform_2, window_bounds = array<i64: 3, 128>}, {transform_indices = @transform_3, window_bounds = array<i64: 1, 128>}]} {
    %c0 = arith.constant 0 : index
    %c0_0 = arith.constant 0 : index
    %0 = vector.load %arg3[%c0, %c0_0] : memref<3x128xi32, #tpu.memory_space<vmem>>, vector<1x128xi32>
    %c1 = arith.constant 1 : index
    %c0_1 = arith.constant 0 : index
    %1 = vector.load %arg3[%c1, %c0_1] : memref<3x128xi32, #tpu.memory_space<vmem>>, vector<1x128xi32>
    %c2 = arith.constant 2 : index
    %c0_2 = arith.constant 0 : index
    %2 = vector.load %arg3[%c2, %c0_2] : memref<3x128xi32, #tpu.memory_space<vmem>>, vector<1x128xi32>
    %3 = tpu.concatenate %0, %2 in 1 : vector<1x128xi32>, vector<1x128xi32> -> vector<1x256xi32>
    %4 = tpu.iota {dimensions = array<i32: 0>} : vector<64x256xi32>
    %5 = vector.broadcast %3 : vector<1x256xi32> to vector<64x256xi32>
    %6 = arith.cmpi eq, %4, %5 : vector<64x256xi32>
    %7 = arith.extui %6 : vector<64x256xi1> to vector<64x256xi32>
    %8 = arith.sitofp %7 : vector<64x256xi32> to vector<64x256xf32>
    %9 = arith.truncf %8 : vector<64x256xf32> to vector<64x256xbf16>
    %10 = tpu.iota {dimensions = array<i32: 0>} : vector<8x128xi32>
    %11 = vector.broadcast %1 : vector<1x128xi32> to vector<8x128xi32>
    %12 = arith.cmpi eq, %10, %11 : vector<8x128xi32>
    %13 = arith.extui %12 : vector<8x128xi1> to vector<8x128xi32>
    %14 = arith.sitofp %13 : vector<8x128xi32> to vector<8x128xf32>
    %15 = arith.truncf %14 : vector<8x128xf32> to vector<8x128xbf16>
    %c0_3 = arith.constant 0 : index
    %c0_4 = arith.constant 0 : index
    %c0_5 = arith.constant 0 : index
    %16 = vector.load %arg1[%c0_3, %c0_4, %c0_5] : memref<3x32x64xbf16, #tpu.memory_space<vmem>>, vector<1x32x64xbf16>
    %17 = vector.shape_cast %16 : vector<1x32x64xbf16> to vector<32x64xbf16>
    %cst = arith.constant dense<0.000000e+00> : vector<32x256xf32>
    %18 = tpu.matmul %17, %9, %cst {dimension_numbers = #tpu.dot_dimension_numbers<[1], [0], [0], [1], [0, 0, 1, 1], [], []>} : vector<32x64xbf16>, vector<64x256xbf16>, vector<32x256xf32> -> vector<32x256xf32>
    %c1_6 = arith.constant 1 : index
    %c0_7 = arith.constant 0 : index
    %c0_8 = arith.constant 0 : index
    %19 = vector.load %arg1[%c1_6, %c0_7, %c0_8] : memref<3x32x64xbf16, #tpu.memory_space<vmem>>, vector<1x32x64xbf16>
    %20 = vector.shape_cast %19 : vector<1x32x64xbf16> to vector<32x64xbf16>
    %cst_9 = arith.constant dense<0.000000e+00> : vector<32x256xf32>
    %21 = tpu.matmul %20, %9, %cst_9 {dimension_numbers = #tpu.dot_dimension_numbers<[1], [0], [0], [1], [0, 0, 1, 1], [], []>} : vector<32x64xbf16>, vector<64x256xbf16>, vector<32x256xf32> -> vector<32x256xf32>
    %22 = arith.addf %18, %21 : vector<32x256xf32>
    %c2_10 = arith.constant 2 : index
    %c0_11 = arith.constant 0 : index
    %c0_12 = arith.constant 0 : index
    %23 = vector.load %arg1[%c2_10, %c0_11, %c0_12] : memref<3x32x64xbf16, #tpu.memory_space<vmem>>, vector<1x32x64xbf16>
    %24 = vector.shape_cast %23 : vector<1x32x64xbf16> to vector<32x64xbf16>
    %cst_13 = arith.constant dense<0.000000e+00> : vector<32x256xf32>
    %25 = tpu.matmul %24, %9, %cst_13 {dimension_numbers = #tpu.dot_dimension_numbers<[1], [0], [0], [1], [0, 0, 1, 1], [], []>} : vector<32x64xbf16>, vector<64x256xbf16>, vector<32x256xf32> -> vector<32x256xf32>
    %26 = arith.addf %22, %25 : vector<32x256xf32>
    %c0_14 = arith.constant 0 : index
    %c0_15 = arith.constant 0 : index
    %c0_16 = arith.constant 0 : index
    %27 = vector.load %arg2[%c0_14, %c0_15, %c0_16] : memref<3x32x8xbf16, #tpu.memory_space<vmem>>, vector<1x32x8xbf16>
    %28 = vector.shape_cast %27 : vector<1x32x8xbf16> to vector<32x8xbf16>
    %cst_17 = arith.constant dense<0.000000e+00> : vector<32x128xf32>
    %29 = tpu.matmul %28, %15, %cst_17 {dimension_numbers = #tpu.dot_dimension_numbers<[1], [0], [0], [1], [0, 0, 1, 1], [], []>} : vector<32x8xbf16>, vector<8x128xbf16>, vector<32x128xf32> -> vector<32x128xf32>
    %c1_18 = arith.constant 1 : index
    %c0_19 = arith.constant 0 : index
    %c0_20 = arith.constant 0 : index
    %30 = vector.load %arg2[%c1_18, %c0_19, %c0_20] : memref<3x32x8xbf16, #tpu.memory_space<vmem>>, vector<1x32x8xbf16>
    %31 = vector.shape_cast %30 : vector<1x32x8xbf16> to vector<32x8xbf16>
    %cst_21 = arith.constant dense<0.000000e+00> : vector<32x128xf32>
    %32 = tpu.matmul %31, %15, %cst_21 {dimension_numbers = #tpu.dot_dimension_numbers<[1], [0], [0], [1], [0, 0, 1, 1], [], []>} : vector<32x8xbf16>, vector<8x128xbf16>, vector<32x128xf32> -> vector<32x128xf32>
    %33 = arith.addf %29, %32 : vector<32x128xf32>
    %c2_22 = arith.constant 2 : index
    %c0_23 = arith.constant 0 : index
    %c0_24 = arith.constant 0 : index
    %34 = vector.load %arg2[%c2_22, %c0_23, %c0_24] : memref<3x32x8xbf16, #tpu.memory_space<vmem>>, vector<1x32x8xbf16>
    %35 = vector.shape_cast %34 : vector<1x32x8xbf16> to vector<32x8xbf16>
    %cst_25 = arith.constant dense<0.000000e+00> : vector<32x128xf32>
    %36 = tpu.matmul %35, %15, %cst_25 {dimension_numbers = #tpu.dot_dimension_numbers<[1], [0], [0], [1], [0, 0, 1, 1], [], []>} : vector<32x8xbf16>, vector<8x128xbf16>, vector<32x128xf32> -> vector<32x128xf32>
    %37 = arith.addf %33, %36 : vector<32x128xf32>
    %38 = vector.extract_strided_slice %26 {offsets = [0, 0], sizes = [32, 128], strides = [1, 1]} : vector<32x256xf32> to vector<32x128xf32>
    %39 = vector.extract_strided_slice %26 {offsets = [0, 128], sizes = [32, 128], strides = [1, 1]} : vector<32x256xf32> to vector<32x128xf32>
    %40 = arith.mulf %38, %37 : vector<32x128xf32>
    %41 = arith.mulf %40, %39 : vector<32x128xf32>
    %cst_26 = arith.constant dense<0.000000e+00> : vector<128xf32>
    %42 = vector.multi_reduction <add>, %41, %cst_26 [0] : vector<32x128xf32> to vector<128xf32>
    %43 = vector.shape_cast %42 : vector<128xf32> to vector<1x128xf32>
    %c0_27 = arith.constant 0 : index
    %c0_28 = arith.constant 0 : index
    %44 = vector.load %arg4[%c0_27, %c0_28] : memref<1x128xf32, #tpu.memory_space<vmem>>, vector<1x128xf32>
    tpu.vector_store %arg4[%c0_27, %c0_28], %43 {strides = array<i32>} : memref<1x128xf32, #tpu.memory_space<vmem>>, vector<1x128xf32>,
    return
  }
  func.func @transform_0(%arg0: i32) -> (i32, i32, i32) {
    %c0_i32 = arith.constant 0 : i32
    %c0_i32_0 = arith.constant 0 : i32
    %c0_i32_1 = arith.constant 0 : i32
    %c0_i32_2 = arith.constant 0 : i32
    return %c0_i32, %c0_i32_0, %c0_i32_1 : i32, i32, i32
  }
  func.func @transform_1(%arg0: i32) -> (i32, i32, i32) {
    %c0_i32 = arith.constant 0 : i32
    %c0_i32_0 = arith.constant 0 : i32
    %c0_i32_1 = arith.constant 0 : i32
    %c0_i32_2 = arith.constant 0 : i32
    return %c0_i32, %c0_i32_0, %c0_i32_1 : i32, i32, i32
  }
  func.func @transform_2(%arg0: i32) -> (i32, i32) {
    %c0_i32 = arith.constant 0 : i32
    %c0_i32_0 = arith.constant 0 : i32
    return %c0_i32, %arg0 : i32, i32
  }
  func.func @transform_3(%arg0: i32) -> (i32, i32) {
    %c0_i32 = arith.constant 0 : i32
    %c0_i32_0 = arith.constant 0 : i32
    return %c0_i32, %arg0 : i32, i32
  }
}

</mosaic_0001>

<bundles_post_ra>
// kernel: tpu_custom_call.1
= control target key start
LH: loop header
LB: loop body
LE: loop exit
PB: predicated region body
PF: predicated region fallthrough
CT: control target
= control target key end

     0   :  { %8 = vsyncpa [#allocation3], 0  ;;  %s1320_s0 = inlined_call_operand.vmem [shape: bf16[3,32,64], index: 0, kind: input, shape index: {}]   ;;  %s1321_s1 = inlined_call_operand.vmem [shape: bf16[3,32,8], index: 1, kind: input, shape index: {}]   ;;  %s1322_s2 = inlined_call_operand.vmem [shape: s32[3,256], index: 2, kind: input, shape index: {}]   ;;  %s1323_s3 = inlined_call_operand.hbm [shape: f32[1,256], index: 3, kind: output, shape index: {}]  }
   0x1   :  { %10 = vsyncpa [#allocation3 + $0x1], 0  ;;  %s1070_s12 = smov 0   ;;  %s1072_s13 = smov 0  }
   0x2   :  { %s1074_s14 = smov 0   ;;  %s1076_s15 = smov 0  }
   0x3 LB: > { %s1091_s16 = sadd.s32 4294967295, %s1044_s15   ;;  %s784_s17 = sadd.s32 4294967294, %s1044_s15   ;;  %s1044_s15 = sphi %s1076_s15, %s1345_s15   ;;  %s1040_s14 = sphi %s1074_s14, %s1344_s14   ;;  %s1036_s13 = sphi %s1072_s13, %s1343_s13   ;;  %s1032_s12 = sphi %s1070_s12, %s1342_s12  }
   0x4   : > { %s1095_s18 = sadd.s32 1, %s1044_s15   ;;  %s91_s19 = sadd.s32 1, %s1040_s14 }
   0x5   : > { %s88_s20 = ssub.s32 %s1044_s15, %s1095_s18  ;;  %p101_p0 = scmp.ne.s32.totalorder %s1040_s14, %s1036_s13 }
   0x6   : > { %p89_p1 = scmp.eq.s32.totalorder %s88_s20, 0  ;;  %p102_p2 = scmp.eq.s32.totalorder %s1091_s16, 1 }
   0x7   : > { %p107_p3 = scmp.ne.s32.totalorder %s1036_s13, %s1032_s12  ;;  %p108_p4 = scmp.eq.s32.totalorder %s784_s17, 1 }
   0x8   : > { %s1106_s21 = scalar_select %p89_p1, %s1040_s14, %s91_s19  }
   0x9   : > { %p1108_p5 = por %p102_p2, %p101_p0  ;;  %p1112_p6 = por %p108_p4, %p107_p3 }
   0xa   : > { %p787_p7 = scmp.ge.s32.totalorder %s1044_s15, 1  ;;  %p139_p8 = scmp.lt.s32.totalorder %s1044_s15, 3 }
   0xc   : > { %p140_p9 = pnand %p787_p7, %p139_p8 }
   0xd   : > { %p161_p10 = scmp.lt.s32.totalorder (!%p140_p9), %s1091_s16, 1  ;;  %s159_s8 = sand.u32 (!%p140_p9), 1, %s1036_s13  }
   0xe   : > { %143 = sbr.rel (%p140_p9) target bundleno = 311 (0x137), region = 32  ;;  %s897_s9 = sshll.u32 (!%p140_p9), %s1091_s16, 4 }
   0xf   : > { %s160_s10 = scalar_lea.vmem (!%p140_p9), [#allocation2], %s159_s8  ;;  %s727_s20 = scalar_lea.hbm (!%p140_p9), %s1323_s3, %s897_s9 }
  0x10   : > { %s729_s11 = sshll.u32 (!%p140_p9), %s160_s10, 4  ;;  %s1049_s26 = smov (!%p140_p9), [#allocation2]   ;;  %s730_s11 = int_to_ptr.vmem [resolvable:$true] %s729_s11 }
  0x11   : > { %s988_s27 = sshll.u32 (!%p140_p9), %s1049_s26, 4  ;;  %s989_s27 = int_to_ptr.vmem [resolvable:$false] %s988_s27 }
  0x12   : > { %p991_p0 = scmp.lt.s32.totalorder (!%p140_p9), %s730_s11, %s989_s27 }
  0x13   : > { %v169_v0 = vlaneseq  ;;  %v1046_v1 = vmov 0   ;;  %s162_s24 = scalar_select %p161_p10, %s1091_s16, 1  ;;  %v1047_v12 = vmov 1.0|1.0   ;;  %v1048_v21 = vmov 0.0   ;;  %v972_v25 = vld [vmem:[%s1320_s0 + $0x10] sm:$0xff]  }
  0x14   : > { %308 = vmatprep.mubr.bf16.mxu0 %v1046_v1  ;;  %377 = vmatprep.mubr.bf16.mxu1 %v1046_v1  ;;  %v973_v26 = vld [vmem:[%s1320_s0] sm:$0xff]   ;;  %v974_v28 = vld [vmem:[%s1320_s0 + $0x18] sm:$0xff]   ;;  %v975_v29 = vld [vmem:[%s1320_s0 + $0x8] sm:$0xff]   ;;  %s990_s16 = scalar_lea.vmem %s989_s27, 32 }
  0x15   : > { %v170_v2 = vshrl.u32 %v169_v0, 7  ;;  %s788_s25 = sshll.u32 %s162_s24, 2  ;;  %v976_v30 = vld [vmem:[%s1321_s1 + $0x10] sm:$0xff]   ;;  %v977_v31 = vld [vmem:[%s1320_s0 + $0x20] sm:$0xff]   ;;  %v978_v32 = vld [vmem:[%s1321_s1 + $0x18] sm:$0xff]   ;;  %s717_s24 = scalar_lea.sflag [#allocation3], %s159_s8 }
  0x16   : > { %s164_s28 = scalar_lea.vmem %s1322_s2, %s788_s25  ;;  %v979_v33 = vld [vmem:[%s1321_s1] sm:$0xff]   ;;  %v980_v34 = vld [vmem:[%s1320_s0 + $0x28] sm:$0xff]   ;;  %s984_s25 = scalar_lea.vmem %s730_s11, 16 }
  0x17   : > { %v176_v3 = vadd.s32 48, %v170_v2  ;;  %v177_v4 = vadd.s32 56, %v170_v2  ;;  %v174_v5 = vadd.s32 32, %v170_v2  ;;  %v175_v6 = vadd.s32 40, %v170_v2  ;;  %v790_v9 = vld [vmem:[%s164_s28 + $0x2] ss:$0 sm:$0xff]  ;;  %p985_p11 = scmp.ne.s32.totalorder %s730_s11, %s984_s25  ;;  %p992_p1 = scmp.lt.s32.totalorder %s990_s16, %s984_s25 }
  0x18   : > { %v172_v7 = vadd.s32 16, %v170_v2  ;;  %v173_v8 = vadd.s32 24, %v170_v2  ;;  %v789_v10 = vld [vmem:[%s164_s28] ss:$0 sm:$0xff]  ;;  %v171_v14 = vadd.s32 8, %v170_v2  ;;  %v981_v35 = vld [vmem:[%s1321_s1 + $0x8] sm:$0xff]  }
  0x19   : > { %vm199_vm0 = vcmp.eq.s32.totalorder %v176_v3, %v790_v9  ;;  %vm201_vm1 = vcmp.eq.s32.totalorder %v177_v4, %v790_v9  ;;  %vm198_vm2 = vcmp.eq.s32.totalorder %v176_v3, %v789_v10  ;;  %vm200_vm3 = vcmp.eq.s32.totalorder %v177_v4, %v789_v10  ;;  %v807_v16 = vld [vmem:[%s164_s28 + $0x1] ss:$0 sm:$0xff]  ;;  %v983_v37 = vld [vmem:[%s1321_s1 + $0x28] sm:$0xff]   ;;  %p986_p12 = pnand %p985_p11, %p1108_p5  ;;  %p993_p2 = por %p992_p1, %p991_p0 }
  0x1a   : > { %vm1125_vm4 = vmpackc.low %vm201_vm1, %vm199_vm0  ;;  %vm195_vm5 = vcmp.eq.s32.totalorder %v174_v5, %v790_v9  ;;  %vm197_vm6 = vcmp.eq.s32.totalorder %v175_v6, %v790_v9  ;;  %vm194_vm7 = vcmp.eq.s32.totalorder %v174_v5, %v789_v10  ;;  %vm196_vm8 = vcmp.eq.s32.totalorder %v175_v6, %v789_v10  ;;  %v982_v36 = vld [vmem:[%s1321_s1 + $0x20] sm:$0xff]  }
  0x1b   : > { %816 = vmatprep.subr.msk.bf16.mxu0 %vm1125_vm4, %v1047_v12  ;;  %836 = vmatprep.subr.msk.bf16.mxu1 %vm1125_vm4, %v1047_v12  ;;  %vm1135_vm9 = vmpackc.low %vm200_vm3, %vm198_vm2  ;;  %vm191_vm10 = vcmp.eq.s32.totalorder %v172_v7, %v790_v9  ;;  %vm193_vm11 = vcmp.eq.s32.totalorder %v173_v8, %v790_v9  ;;  %vm190_vm15 = vcmp.eq.s32.totalorder %v172_v7, %v789_v10  ;;  %p987_p13 = pneg %p986_p12 }
  0x1c   : > { %818 = vmatpush1.bf16.msk.msra.mxu0 %vm1135_vm9, %v1047_v12  ;;  %838 = vmatpush1.bf16.msk.msra.mxu1 %vm1135_vm9, %v1047_v12  ;;  %vm1145_vm12 = vmpackc.low %vm197_vm6, %vm195_vm5  ;;  %vm192_vm0 = vcmp.eq.s32.totalorder %v173_v8, %v789_v10  ;;  %vm187_vm1 = vcmp.eq.s32.totalorder %v170_v2, %v790_v9  ;;  %vm189_vm2 = vcmp.eq.s32.totalorder %v171_v14, %v790_v9 }
  0x1d   : > { %820 = vmatprep.subr.msk.bf16.mxu0 %vm1145_vm12, %v1047_v12  ;;  %840 = vmatprep.subr.msk.bf16.mxu1 %vm1145_vm12, %v1047_v12  ;;  %vm1156_vm13 = vmpackc.low %vm196_vm8, %vm194_vm7  ;;  %vm246_vm3 = vcmp.eq.s32.totalorder %v170_v2, %v807_v16  ;;  %vm186_vm7 = vcmp.eq.s32.totalorder %v170_v2, %v789_v10  ;;  %vm188_vm8 = vcmp.eq.s32.totalorder %v171_v14, %v789_v10  ;;  %p994_p3 = pnand %p993_p2, %p987_p13 }
  0x1e   : > { %vm1160_vm14 = vmpackc.low %vm193_vm11, %vm191_vm10  ;;  %v808_v22 = vsel %vm246_vm3, 1.0, %v1048_v21  ;;  %vm506_vm11 = vcmask 1043456  }
  0x1f   : > { %vm1176_vm5 = vmpackc.low %vm192_vm0, %vm190_vm15  ;;  %v249_v24 = vpack.c.bf16 %v808_v22, %v808_v22  ;;  %vm269_vm15 = vcmask 523264  }
  0x20   : > { %822 = vmatpush1.bf16.msk.msra.mxu0 %vm1156_vm13, %v1047_v12  ;;  %842 = vmatpush1.bf16.msk.msra.mxu1 %vm1156_vm13, %v1047_v12  ;;  %vm1180_vm6 = vmpackc.low %vm189_vm2, %vm187_vm1 }
  0x21   : > { %824 = vmatprep.subr.msk.bf16.mxu0 %vm1160_vm14, %v1047_v12  ;;  %844 = vmatprep.subr.msk.bf16.mxu1 %vm1160_vm14, %v1047_v12  ;;  %vm1196_vm10 = vmpackc.low %vm188_vm8, %vm186_vm7  ;;  %v508_v27 = vsel %vm506_vm11, %v249_v24, 0 }
  0x24   : > { %826 = vmatpush1.bf16.msk.msra.mxu0 %vm1176_vm5, %v1047_v12  ;;  %846 = vmatpush1.bf16.msk.msra.mxu1 %vm1176_vm5, %v1047_v12 }
  0x25   : > { %828 = vmatprep.subr.msk.bf16.mxu0 %vm1180_vm6, %v1047_v12  ;;  %848 = vmatprep.subr.msk.bf16.mxu1 %vm1180_vm6, %v1047_v12 }
  0x28   : > { %830 = vmatpush1.bf16.msk.msra.mxu0 %vm1196_vm10, %v1047_v12  ;;  %850 = vmatpush1.bf16.msk.msra.mxu1 %vm1196_vm10, %v1047_v12 }
  0x29   : > { %860 = vmatprep.subr.msk.bf16.mxu0 %vm1125_vm4, %v1047_v12  ;;  %927 = vmatprep.subr.msk.bf16.mxu1 %vm506_vm11, %v249_v24  ;;  %vm499_vm4 = vcmask 64512  }
  0x2b   : > { %831 = vmatmul.mubr.msk.bf16.vlgmr.msra.gmra.mxu0 %vm269_vm15, %v972_v25  ;;  %851 = vmatmul.mubr.msk.bf16.vlgmr.msra.gmra.mxu1 %vm269_vm15, %v973_v26 }
  0x2c   : > { %862 = vmatpush1.bf16.msk.msra.mxu0 %vm1135_vm9, %v1047_v12  ;;  %318 = vmatprep.mubr.bf16.mxu0 %v1046_v1 }
  0x2d   : > { %864 = vmatprep.subr.msk.bf16.mxu0 %vm1145_vm12, %v1047_v12  ;;  %387 = vmatprep.mubr.bf16.mxu1 %v1046_v1 }
  0x2e   : > { %910 = vmatpush3.bf16.msra.mxu1 %v508_v27 }
  0x2f   : > { %928 = vmatprep.subr.msk.bf16.mxu1 %vm506_vm11, %v249_v24 }
  0x30   : > { %866 = vmatpush1.bf16.msk.msra.mxu0 %vm1156_vm13, %v1047_v12 }
  0x31   : > { %868 = vmatprep.subr.msk.bf16.mxu0 %vm1160_vm14, %v1047_v12 }
  0x33   : > { %832 = vmatmul.mubr.msk.bf16.gmra.mxu0 %vm269_vm15, %v974_v28  ;;  %852 = vmatmul.mubr.msk.bf16.gmra.mxu1 %vm269_vm15, %v975_v29 }
  0x34   : > { %870 = vmatpush1.bf16.msk.msra.mxu0 %vm1176_vm5, %v1047_v12  ;;  %451 = vmatprep.mubr.bf16.mxu0 %v1046_v1 }
  0x35   : > { %872 = vmatprep.subr.msk.bf16.mxu0 %vm1180_vm6, %v1047_v12  ;;  %911 = vmatprep.mubr.msk.bf16.mxu1 %vm499_vm4, %v976_v30 }
  0x38   : > { %874 = vmatpush1.bf16.msk.msra.mxu0 %vm1196_vm10, %v1047_v12 }
  0x39   : > { %929 = vmatprep.subr.msk.bf16.mxu0 %vm506_vm11, %v249_v24 }
  0x3b   : > { %875 = vmatmul.mubr.msk.bf16.vlgmr.msra.gmra.mxu0 %vm269_vm15, %v977_v31  ;;  %912 = vmatmul.mubr.msk.bf16.vlgmr.msra.gmra.mxu1 %vm499_vm4, %v978_v32 }
  0x3c   : > { %922 = vmatpush3.bf16.msra.mxu0 %v508_v27  ;;  %916 = vmatpush3.bf16.msra.mxu1 %v508_v27 }
  0x3d   : > { %461 = vmatprep.mubr.bf16.mxu0 %v1046_v1  ;;  %917 = vmatprep.mubr.msk.bf16.mxu1 %vm499_vm4, %v979_v33 }
  0x43   : > { %876 = vmatmul.mubr.msk.bf16.gmra.mxu0 %vm269_vm15, %v980_v34  ;;  %918 = vmatmul.mubr.msk.bf16.vlgmr.msra.gmra.mxu1 %vm499_vm4, %v981_v35 }
  0x44   : > { %923 = vmatprep.mubr.msk.bf16.mxu0 %vm499_vm4, %v982_v36 }
  0x4b   : > { %924 = vmatmul.mubr.msk.bf16.vlgmr.msra.gmra.mxu0 %vm499_vm4, %v983_v37 }
  0xeb   : > { %v310_v38 = vpop.f32.mrf.mxu0  ;;  %v379_v39 = vpop.f32.mrf.mxu1 }
  0xec   : > { %v380_v9 = vadd.f32 %v379_v39, %v310_v38 }
  0xed   : > { %v312_v40 = vpop.f32.mrf.mxu0  ;;  %v381_v41 = vpop.f32.mrf.mxu1 }
  0xee   : > { %v382_v19 = vadd.f32 %v381_v41, %v312_v40 }
  0xef   : > { %v314_v42 = vpop.f32.mrf.mxu0  ;;  %v383_v43 = vpop.f32.mrf.mxu1 }
  0xf0   : > { %v384_v12 = vadd.f32 %v383_v43, %v314_v42 }
  0xf1   : > { %v316_v44 = vpop.f32.mrf.mxu0  ;;  %v385_v45 = vpop.f32.mrf.mxu1 }
  0xf2   : > { %v386_v20 = vadd.f32 %v385_v45, %v316_v44 }
  0xf3   : > { %v320_v46 = vpop.f32.mrf.mxu0  ;;  %v389_v47 = vpop.f32.mrf.mxu1 }
  0xf4   : > { %v390_v13 = vadd.f32 %v389_v47, %v320_v46 }
  0xf5   : > { %v322_v48 = vpop.f32.mrf.mxu0  ;;  %v391_v49 = vpop.f32.mrf.mxu1 }
  0xf6   : > { %v392_v28 = vadd.f32 %v391_v49, %v322_v48 }
  0xf7   : > { %v324_v50 = vpop.f32.mrf.mxu0  ;;  %v393_v51 = vpop.f32.mrf.mxu1 }
  0xf8   : > { %v394_v21 = vadd.f32 %v393_v51, %v324_v50 }
  0xf9   : > { %v326_v52 = vpop.f32.mrf.mxu0  ;;  %v395_v53 = vpop.f32.mrf.mxu1 }
  0xfa   : > { %v396_v34 = vadd.f32 %v395_v53, %v326_v52 }
  0xfb   : > { %v453_v54 = vpop.f32.mrf.mxu0  ;;  %v913_v55 = vpop.f32.mrf.mxu1 }
  0xfc   : > { %v472_v15 = vadd.f32 %v453_v54, %v380_v9 }
  0xfd   : > { %v455_v56 = vpop.f32.mrf.mxu0  ;;  %v544_v57 = vpop.f32.mrf.mxu1 }
  0xfe   : > { %v473_v29 = vadd.f32 %v455_v56, %v382_v19 }
  0xff   : > { %v457_v58 = vpop.f32.mrf.mxu0  ;;  %v914_v59 = vpop.f32.mrf.mxu1 }
 0x100   : > { %v474_v22 = vadd.f32 %v457_v58, %v384_v12 }
 0x101   : > { %v459_v60 = vpop.f32.mrf.mxu0  ;;  %v547_v61 = vpop.f32.mrf.mxu1 }
 0x102   : > { %v475_v30 = vadd.f32 %v459_v60, %v386_v20 }
 0x103   : > { %v463_v62 = vpop.f32.mrf.mxu0  ;;  %v919_v63 = vpop.f32.mrf.mxu1 }
 0x104   : > { %v618_v10 = vadd.f32 %v919_v63, %v913_v55  ;;  %v476_v24 = vadd.f32 %v463_v62, %v390_v13 }
 0x105   : > { %v465_v0 = vpop.f32.mrf.mxu0  ;;  %v609_v1 = vpop.f32.mrf.mxu1 }
 0x106   : > { %v610_v6 = vadd.f32 %v609_v1, %v544_v57  ;;  %v477_v35 = vadd.f32 %v465_v0, %v392_v28 }
 0x107   : > { %v467_v2 = vpop.f32.mrf.mxu0  ;;  %v920_v3 = vpop.f32.mrf.mxu1 }
 0x108   : > { %v621_v16 = vadd.f32 %v920_v3, %v914_v59  ;;  %v478_v31 = vadd.f32 %v467_v2, %v394_v21 }
 0x109   : > { %v469_v4 = vpop.f32.mrf.mxu0  ;;  %v612_v7 = vpop.f32.mrf.mxu1 }
 0x10a   : > { %v613_v17 = vadd.f32 %v612_v7, %v547_v61  ;;  %v479_v39 = vadd.f32 %v469_v4, %v396_v34 }
 0x10b   : > { %v925_v5 = vpop.f32.mrf.mxu0 }
 0x10c   : > { %v696_v18 = vadd.f32 %v925_v5, %v618_v10 }
 0x10d   : > { %v679_v8 = vpop.f32.mrf.mxu0 }
 0x10e   : > { %v694_v11 = vadd.f32 %v679_v8, %v610_v6  ;;  %v700_v32 = vmul.f32 %v696_v18, %v476_v24 }
 0x10f   : > { %v926_v14 = vpop.f32.mrf.mxu0 }
 0x110   : > { %v698_v25 = vmul.f32 %v694_v11, %v472_v15  ;;  %v697_v26 = vadd.f32 %v926_v14, %v621_v16  ;;  %v704_v40 = vmul.f32 %v700_v32, %v477_v35 }
 0x111   : > { %v682_v23 = vpop.f32.mrf.mxu0 }
 0x112   : > { %v695_v27 = vadd.f32 %v682_v23, %v613_v17  ;;  %v702_v36 = vmul.f32 %v698_v25, %v473_v29  ;;  %v701_v37 = vmul.f32 %v697_v26, %v478_v31 }
 0x114   : > { %v699_v33 = vmul.f32 %v695_v27, %v474_v22  ;;  %v705_v42 = vmul.f32 %v701_v37, %v479_v39 }
 0x116   : > { %v703_v38 = vmul.f32 %v699_v33, %v475_v30 }
 0x118   : > { %v706_v41 = vadd.f32 %v703_v38, %v702_v36 }
 0x11a   : > { %v707_v43 = vadd.f32 %v706_v41, %v704_v40 }
 0x11c   : > { %v708_v44 = vadd.f32 %v707_v43, %v705_v42 }
 0x11e   : > { %v709_v45 = vrot.slane %v708_v44, 4 }
 0x120   : > { %v710_v46 = vadd.f32 %v709_v45, %v708_v44 }
 0x122   : > { %v711_v47 = vrot.slane %v710_v46, 2 }
 0x124   : > { %v712_v48 = vadd.f32 %v711_v47, %v710_v46 }
 0x126   : > { %v713_v49 = vrot.slane %v712_v48, 1 }
 0x128   : > { %v714_v50 = vadd.f32 %v713_v49, %v712_v48 }
 0x12a   : > { %715 = vst [vmem:[%s160_s10] sm:$0x1] %v714_v50 }
 0x12b   : > { %997 = shalt.err (!%p994_p3)
}
 0x12c   : > { %s998_s28 = scalar_lea.hbm %s727_s20, 16  ;;  %s1002_s4 = scalar_lea.hbm %s1323_s3, 32 }
 0x12d   : > { %p999_p4 = scmp.ne.s32.totalorder %s727_s20, %s998_s28  ;;  %p1003_p9 = scmp.lt.s32.totalorder %s727_s20, %s1323_s3 }
 0x12e   : > { %p1004_p10 = scmp.lt.s32.totalorder %s1002_s4, %s998_s28 }
 0x12f   : > { %p1000_p7 = pnand %p999_p4, %p1108_p5 }
 0x130   : > { %p1005_p11 = por %p1004_p10, %p1003_p9 }
 0x131   : > { %p1001_p8 = pneg %p1000_p7 }
 0x133   : > { %p1006_p12 = pnand %p1005_p11, %p1001_p8 }
 0x135   : > { %1009 = shalt.err (!%p1006_p12)
}
 0x136   : > { %930 = dma.vmem_to_hbm [thread:$0]  (%p1108_p5), %s730_s11, 16, %s727_s20, %s717_s24  }
 0x137 PF: > { %p936_p13 = scmp.ge.s32.totalorder %s1044_s15, 2  ;;  %s741_s7 = sand.u32 1, %s1032_s12  }
 0x138   : > { %s742_s8 = scalar_lea.sflag [#allocation3], %s741_s7 }
 0x139   : > { %p933_p0 = pnand %p936_p13, %p1112_p6 }
 0x13b   : > { %p934_p1 = pneg %p933_p0 }
 0x13d   : > { %1027 = dma.done.wait (%p934_p1), %s742_s8, 16  }
 0x13e   : > { %1029 = vsyncadd (%p934_p1), %s742_s8, 4294967280  ;;  %p13_p2 = scmp.ge.s32.totalorder %s1095_s18, 4   ;;  %s1342_s12 = smov %s1036_s13 }
 0x13f   : > { %s1343_s13 = smov %s1040_s14  ;;  %s1344_s14 = smov %s1106_s21 }
 0x140   : > { %s1345_s15 = smov %s1095_s18  ;;  %15 = sbr.rel (!%p13_p2) target bundleno = 3 (0x3), region = 71 }
 0x145   :  { %746 = vsyncpa [#allocation3], 1 }
 0x146   :  { %748 = vsyncpa [#allocation3 + $0x1], 1 }

</bundles_post_ra>
